<compile_context>
chip_gen: v7x
topology: tpu7x:2x2x1
jax: 0.10.0
libtpu: 0.0.40
codegen_flags: <defaults>
</compile_context>

<pallas_src>
import functools

import jax
import jax.numpy as jnp
from jax import lax
from jax.experimental import pallas as pl
from jax.experimental.pallas import tpu as pltpu


# ----------------------------- kernels ---------------------------------------


def _kernel_blockdiag(x_ref, prev_ref, wxa_ref, wbd_ref, ball_ref, out_ref):
    """General path: prev half of conv3 as one matmul with a block-diagonal weight."""
    y = jnp.dot(x_ref[...], wxa_ref[...], preferred_element_type=jnp.float32)
    p = jnp.dot(prev_ref[...], wbd_ref[...], preferred_element_type=jnp.float32)
    out_ref[...] = (y + p + ball_ref[...]).astype(out_ref.dtype)


def _kernel_sliced(x_ref, prev_ref, wxa_ref, w3p_ref, ball_ref, out_ref, *, cout):
    """Cout % 128 == 0 path: four dense (TM,Cout)@(Cout,Cout) matmuls on aligned stripes
    (avoids the 4x zero-FLOP waste of the block-diagonal form; matters most on v5e)."""
    x = x_ref[...]
    for q in range(4):
        sl = slice(q * cout, (q + 1) * cout)
        y = jnp.dot(x, wxa_ref[:, sl], preferred_element_type=jnp.float32)
        p = jnp.dot(prev_ref[:, sl], w3p_ref[...], preferred_element_type=jnp.float32)
        out_ref[:, sl] = (y + p + ball_ref[:, sl]).astype(out_ref.dtype)


# --------------------------- wrapper helpers ----------------------------------


def _tpu_budget():
    """Per-chip (VMEM cap for the kernel, default spatial tile target)."""
    try:
        vmem = int(pltpu.get_tpu_info().vmem_capacity_bytes)
    except Exception:
        vmem = 64 << 20                      # assume the smallest (v7x-class) budget
    cap = min(int(0.75 * vmem), 96 << 20)    # never exceed physical; v7x-safe
    target = 2048 if vmem >= (100 << 20) else 1024
    return cap, target


def _pick_tile(hw, target, want_multi):
    """Spatial tile (sublane dim): full extent or a multiple of 8, bounded by `target`.
    `want_multi` forces >= 2 spatial tiles so both v7x TensorCores get work when N == 1."""
    if want_multi and hw > 8:
        target = min(target, max(8, (((hw + 1) // 2 + 7) // 8) * 8))
    if hw <= target:
        return hw
    limit = max(8, target - target % 8)
    for tm in range(limit, 7, -8):           # largest multiple-of-8 divisor <= target
        if hw % tm == 0:
            return tm
    return limit                             # no clean divisor: ragged last block (Pallas masks it)


def _fuse_weights(params, cp, cd):
    """Fold conv1 + conv2 + conv3 into (Wxa, W3p_padded, b_all); output channels padded to cp."""
    hi = lax.Precision.HIGHEST
    cout, cin = params["w1"].shape[0], params["w1"].shape[1]
    w1t = params["w1"][:, :, 0, 0].T.astype(jnp.float32)                       # (Cin, Cout)
    # ConvTranspose2d weight (in=Cout, out=Cout, 2, 2) -> (4, Cout, Cout), q = 2*ki + kj
    wt = jnp.transpose(params["w2"].astype(jnp.float32), (2, 3, 0, 1)).reshape(4, cout, cout)
    w3 = params["w3"][:, :, 0, 0].astype(jnp.float32)                          # (Cout, 2*Cout)
    w3p, w3y = w3[:, :cout].T, w3[:, cout:].T                                  # (Cout, Cout) each
    wfa = jnp.einsum("qco,od->cqd", wt, w3y, precision=hi).reshape(cout, 4 * cout)
    wxa = jnp.dot(w1t, wfa, precision=hi)                                      # conv1 folded in
    pad = cp - cout
    wxa = jnp.pad(wxa.reshape(cin, 4, cout), ((0, 0), (0, 0), (0, pad))).reshape(cin, 4 * cp)
    w3p_p = jnp.pad(w3p, ((0, 0), (0, pad)))                                   # (Cout, Cp)
    b = (jnp.einsum("c,qco,od->qd", params["b1"].astype(jnp.float32), wt, w3y, precision=hi)
         + (jnp.dot(params["b2"].astype(jnp.float32), w3y, precision=hi)
            + params["b3"].astype(jnp.float32))[None, :])                      # (4, Cout)
    ball = jnp.pad(b, ((0, 0), (0, pad))).reshape(1, 4 * cp).astype(jnp.float32)
    return wxa.astype(cd), w3p_p, ball


def _deup_cat_packed(x_cl, prev_q, params, *, compute_dtype, out_dtype, tile_target=None):
    """Layout-free fast path (no NCHW transposes):
       x_cl:   (N, HW, Cin)      channels-last, spatially flattened
       prev_q: (N, HW, 4*Cout)   lane index = (2*ki + kj)*Cout + c
       returns (N, HW, 4*Cp)     same packing with Cout padded to Cp (pad channels are zero)."""
    N, HW, Cin = x_cl.shape
    cout = params["w1"].shape[0]
    cp = -(-cout // 32) * 32                 # 4*Cp multiple of 128 -> unmasked lane-dense stores
    c4_in, c4 = 4 * cout, 4 * cp
    cd, od = compute_dtype, out_dtype

    wxa, w3p_p, ball = _fuse_weights(params, cp, cd)
    use_sliced = (cp == cout) and (cout % 128 == 0)
    if use_sliced:
        w2nd = w3p_p.astype(cd)                                              # (Cout, Cout)
        kernel = functools.partial(_kernel_sliced, cout=cout)
    else:
        w2nd = jnp.kron(jnp.eye(4, dtype=jnp.float32), w3p_p).astype(cd)     # (4*Cout, 4*Cp)
        kernel = _kernel_blockdiag

    x_cl = x_cl.astype(cd)
    prev_q = prev_q.astype(cd)

    cap, default_target = _tpu_budget()
    target = default_target if tile_target is None else tile_target
    TM = _pick_tile(HW, target, want_multi=(N == 1))

    ib, ob = jnp.dtype(cd).itemsize, jnp.dtype(od).itemsize

    def vmem_need(tm):
        stream = 2 * tm * (Cin * ib + c4_in * ib + c4 * ob)     # double-buffered x / prev / out
        weights = 2 * ((int(wxa.size) + int(w2nd.size)) * ib + c4 * 4)
        return stream + weights

    while vmem_need(TM) > int(0.85 * cap) and TM > 64:
        TM = max(64, ((TM // 2) + 7) // 8 * 8)
    vmem_limit = int(min(cap, max(32 << 20, int(1.4 * vmem_need(TM)))))

    grid = (N, pl.cdiv(HW, TM))

    def const(shape):
        zeros = (0,) * len(shape)
        return pl.BlockSpec(shape, lambda n, m: zeros)

    out = pl.pallas_call(
        kernel,
        out_shape=jax.ShapeDtypeStruct((N, HW, c4), od),
        grid=grid,
        in_specs=[
            pl.BlockSpec((None, TM, Cin), lambda n, m: (n, m, 0)),
            pl.BlockSpec((None, TM, c4_in), lambda n, m: (n, m, 0)),
            const(wxa.shape),
            const(w2nd.shape),
            const(ball.shape),
        ],
        out_specs=pl.BlockSpec((None, TM, c4), lambda n, m: (n, m, 0)),
        compiler_params=pltpu.CompilerParams(
            dimension_semantics=("parallel", "parallel"),
            vmem_limit_bytes=vmem_limit,
        ),
    )(x_cl, prev_q, wxa, w2nd, ball)
    return out, cp


def deup_cat(x, prev, params, *, compute_dtype=jnp.bfloat16, out_dtype=None, tile_target=None):
    """x: (N, Cin, H, W) NCHW.  prev: (N, Cout, 2H, 2W) NCHW.  Returns (N, Cout, 2H, 2W).
    Output dtype defaults to compute_dtype (bf16) to halve the write traffic of this
    memory-bound op; pass out_dtype=jnp.float32 for an exact-layout f32 result."""
    N, Cin, H, W = x.shape
    cout = params["w1"].shape[0]
    HW = H * W
    cd = compute_dtype
    od = cd if out_dtype is None else out_dtype

    # NCHW -> channels-last (x) and quadrant-lane-packed (prev), done in the (usually 16-bit)
    # compute dtype so each transpose moves half the HBM bytes of the f32 original.
    # TODO(synk): if the surrounding network stays channels-last these transposes and the inverse
    # one below disappear entirely -- call _deup_cat_packed directly on that layout.
    x_cl = jnp.transpose(x.astype(cd), (0, 2, 3, 1)).reshape(N, HW, Cin)
    prev_q = jnp.transpose(prev.astype(cd).reshape(N, cout, H, 2, W, 2),
                           (0, 2, 4, 3, 5, 1)).reshape(N, HW, 4 * cout)

    out, cp = _deup_cat_packed(x_cl, prev_q, params,
                               compute_dtype=cd, out_dtype=od, tile_target=tile_target)

    # (N, HW, 4*Cp) -> (N, Cout, 2H, 2W): [n,i,j,ki,kj,c] -> [n,c,2i+ki,2j+kj]; drop pad channels.
    out = jnp.transpose(out.reshape(N, H, W, 2, 2, cp)[..., :cout],
                        (0, 5, 1, 3, 2, 4)).reshape(N, cout, 2 * H, 2 * W)
    return out


# ------------------------------ reference ------------------------------------


def deup_cat_ref(x, prev, params):
    """Pure-JAX reference matching the PyTorch module exactly (NCHW, f32)."""
    hi = lax.Precision.HIGHEST
    w1 = params["w1"][:, :, 0, 0]                                            # (Cout, Cin)
    x1 = jnp.einsum("nchw,oc->nohw", x, w1, precision=hi) + params["b1"][None, :, None, None]
    wt = params["w2"]                                                        # (Cout, Cout, 2, 2)
    N, _, H, W = x1.shape
    cout = wt.shape[1]
    y = jnp.einsum("nchw,cokl->nohwkl", x1, wt, precision=hi)                # (N,Cout,H,W,2,2)
    y = jnp.transpose(y, (0, 1, 2, 4, 3, 5)).reshape(N, cout, 2 * H, 2 * W)
    y = y + params["b2"][None, :, None, None]
    cat = jnp.concatenate([prev, y], axis=1)
    w3 = params["w3"][:, :, 0, 0]                                            # (Cout, 2*Cout)
    return jnp.einsum("nchw,oc->nohw", cat, w3, precision=hi) + params["b3"][None, :, None, None]


# --------------------------------- test --------------------------------------


if __name__ == "__main__":
    key = jax.random.PRNGKey(0)

    def make_case(k, n, cin, cout, h, w, scale=0.1):
        ks = jax.random.split(k, 8)
        params = {
            "w1": scale * jax.random.normal(ks[0], (cout, cin, 1, 1), jnp.float32),
            "b1": scale * jax.random.normal(ks[1], (cout,), jnp.float32),
            "w2": scale * jax.random.normal(ks[2], (cout, cout, 2, 2), jnp.float32),
            "b2": scale * jax.random.normal(ks[3], (cout,), jnp.float32),
            "w3": scale * jax.random.normal(ks[4], (cout, 2 * cout, 1, 1), jnp.float32),
            "b3": scale * jax.random.normal(ks[5], (cout,), jnp.float32),
        }
        x = jax.random.normal(ks[6], (n, cin, h, w), jnp.float32)
        prev = jax.random.normal(ks[7], (n, cout, 2 * h, 2 * w), jnp.float32)
        return x, prev, params

    k1, k2 = jax.random.split(key)

    # Case 1: small channels (block-diag path; Cout padded 4 -> 32 for lane-dense stores).
    x, prev, params = make_case(k1, 2, 8, 4, 16, 16)
    ref = jax.block_until_ready(deup_cat_ref(x, prev, params))

    out_f32 = jax.block_until_ready(
        deup_cat(x, prev, params, compute_dtype=jnp.float32, out_dtype=jnp.float32))
    assert out_f32.shape == ref.shape, out_f32.shape
    err = float(jnp.max(jnp.abs(out_f32 - ref)))
    assert jnp.allclose(out_f32, ref, rtol=1e-3, atol=1e-3), err

    out_bf16 = jax.block_until_ready(deup_cat(x, prev, params))   # bf16 compute + bf16 output
    assert out_bf16.shape == ref.shape, out_bf16.shape
    assert out_bf16.dtype == jnp.bfloat16, out_bf16.dtype
    err = float(jnp.max(jnp.abs(out_bf16.astype(jnp.float32) - ref)))
    assert jnp.allclose(out_bf16.astype(jnp.float32), ref, rtol=5e-2, atol=5e-2), err

    # Case 2: Cout multiple of 128 (sliced-prev path, no padding), N=1 forces >=2 spatial tiles.
    x2, prev2, params2 = make_case(k2, 1, 16, 128, 8, 8)
    ref2 = jax.block_until_ready(deup_cat_ref(x2, prev2, params2))
    out2 = jax.block_until_ready(
        deup_cat(x2, prev2, params2, compute_dtype=jnp.float32, out_dtype=jnp.float32))
    assert out2.shape == ref2.shape, out2.shape
    err2 = float(jnp.max(jnp.abs(out2 - ref2)))
    assert jnp.allclose(out2, ref2, rtol=1e-3, atol=1e-3), err2

    print("KERNEL_OK")
</pallas_src>

<mosaic_0001>
module attributes {stable_mosaic.version = 11 : i64} {
  func.func @_kernel_blockdiag(%arg0: i32, %arg1: i32, %arg2: memref<1x256x8xf32, #tpu.memory_space<vmem>>, %arg3: memref<1x256x16xf32, #tpu.memory_space<vmem>>, %arg4: memref<8x128xf32, #tpu.memory_space<vmem>>, %arg5: memref<16x128xf32, #tpu.memory_space<vmem>>, %arg6: memref<1x128xf32, #tpu.memory_space<vmem>>, %arg7: memref<1x256x128xf32, #tpu.memory_space<vmem>>) attributes {dimension_semantics = [#tpu.dimension_semantics<parallel>, #tpu.dimension_semantics<parallel>], iteration_bounds = array<i64: 2, 1>, scalar_prefetch = 0 : i64, scratch_operands = 0 : i64, tpu.core_type = #tpu.core_type<tc>, window_params = [{transform_indices = @transform_0, window_bounds = array<i64: 1, 256, 8>}, {transform_indices = @transform_1, window_bounds = array<i64: 1, 256, 16>}, {pipeline_mode = #tpu.pipeline_mode<synchronous>, transform_indices = @transform_2, window_bounds = array<i64: 8, 128>}, {pipeline_mode = #tpu.pipeline_mode<synchronous>, transform_indices = @transform_3, window_bounds = array<i64: 16, 128>}, {pipeline_mode = #tpu.pipeline_mode<synchronous>, transform_indices = @transform_4, window_bounds = array<i64: 1, 128>}, {transform_indices = @transform_5, window_bounds = array<i64: 1, 256, 128>}]} {
    %c0 = arith.constant 0 : index
    %c0_0 = arith.constant 0 : index
    %c0_1 = arith.constant 0 : index
    %0 = vector.load %arg2[%c0, %c0_0, %c0_1] : memref<1x256x8xf32, #tpu.memory_space<vmem>>, vector<1x256x8xf32>
    %1 = vector.shape_cast %0 : vector<1x256x8xf32> to vector<256x8xf32>
    %c0_2 = arith.constant 0 : index
    %c0_3 = arith.constant 0 : index
    %2 = vector.load %arg4[%c0_2, %c0_3] : memref<8x128xf32, #tpu.memory_space<vmem>>, vector<8x128xf32>
    %cst = arith.constant dense<0.000000e+00> : vector<256x128xf32>
    %3 = tpu.matmul %1, %2, %cst {dimension_numbers = #tpu.dot_dimension_numbers<[1], [0], [0], [1], [0, 0, 1, 1], [], []>} : vector<256x8xf32>, vector<8x128xf32>, vector<256x128xf32> -> vector<256x128xf32>
    %c0_4 = arith.constant 0 : index
    %c0_5 = arith.constant 0 : index
    %c0_6 = arith.constant 0 : index
    %4 = vector.load %arg3[%c0_4, %c0_5, %c0_6] : memref<1x256x16xf32, #tpu.memory_space<vmem>>, vector<1x256x16xf32>
    %5 = vector.shape_cast %4 : vector<1x256x16xf32> to vector<256x16xf32>
    %c0_7 = arith.constant 0 : index
    %c0_8 = arith.constant 0 : index
    %6 = vector.load %arg5[%c0_7, %c0_8] : memref<16x128xf32, #tpu.memory_space<vmem>>, vector<16x128xf32>
    %cst_9 = arith.constant dense<0.000000e+00> : vector<256x128xf32>
    %7 = tpu.matmul %5, %6, %cst_9 {dimension_numbers = #tpu.dot_dimension_numbers<[1], [0], [0], [1], [0, 0, 1, 1], [], []>} : vector<256x16xf32>, vector<16x128xf32>, vector<256x128xf32> -> vector<256x128xf32>
    %8 = arith.addf %3, %7 : vector<256x128xf32>
    %c0_10 = arith.constant 0 : index
    %c0_11 = arith.constant 0 : index
    %9 = vector.load %arg6[%c0_10, %c0_11] : memref<1x128xf32, #tpu.memory_space<vmem>>, vector<1x128xf32>
    %10 = vector.broadcast %9 : vector<1x128xf32> to vector<256x128xf32>
    %11 = arith.addf %8, %10 : vector<256x128xf32>
    %c0_12 = arith.constant 0 : index
    %c0_13 = arith.constant 0 : index
    %c0_14 = arith.constant 0 : index
    %12 = vector.load %arg7[%c0_12, %c0_13, %c0_14] : memref<1x256x128xf32, #tpu.memory_space<vmem>>, vector<1x256x128xf32>
    %13 = vector.shape_cast %12 : vector<1x256x128xf32> to vector<256x128xf32>
    %14 = vector.shape_cast %11 : vector<256x128xf32> to vector<1x256x128xf32>
    tpu.vector_store %arg7[%c0_12, %c0_13, %c0_14], %14 {strides = array<i32>} : memref<1x256x128xf32, #tpu.memory_space<vmem>>, vector<1x256x128xf32>,
    return
  }
  func.func @transform_0(%arg0: i32, %arg1: i32) -> (i32, i32, i32) {
    %c0_i32 = arith.constant 0 : i32
    %c0_i32_0 = arith.constant 0 : i32
    return %arg0, %arg1, %c0_i32 : i32, i32, i32
  }
  func.func @transform_1(%arg0: i32, %arg1: i32) -> (i32, i32, i32) {
    %c0_i32 = arith.constant 0 : i32
    %c0_i32_0 = arith.constant 0 : i32
    return %arg0, %arg1, %c0_i32 : i32, i32, i32
  }
  func.func @transform_2(%arg0: i32, %arg1: i32) -> (i32, i32) {
    %c0_i32 = arith.constant 0 : i32
    %c0_i32_0 = arith.constant 0 : i32
    %c0_i32_1 = arith.constant 0 : i32
    return %c0_i32, %c0_i32_0 : i32, i32
  }
  func.func @transform_3(%arg0: i32, %arg1: i32) -> (i32, i32) {
    %c0_i32 = arith.constant 0 : i32
    %c0_i32_0 = arith.constant 0 : i32
    %c0_i32_1 = arith.constant 0 : i32
    return %c0_i32, %c0_i32_0 : i32, i32
  }
  func.func @transform_4(%arg0: i32, %arg1: i32) -> (i32, i32) {
    %c0_i32 = arith.constant 0 : i32
    %c0_i32_0 = arith.constant 0 : i32
    %c0_i32_1 = arith.constant 0 : i32
    return %c0_i32, %c0_i32_0 : i32, i32
  }
  func.func @transform_5(%arg0: i32, %arg1: i32) -> (i32, i32, i32) {
    %c0_i32 = arith.constant 0 : i32
    %c0_i32_0 = arith.constant 0 : i32
    return %arg0, %arg1, %c0_i32 : i32, i32, i32
  }
}

</mosaic_0001>

<bundles_post_ra>
// kernel: tpu_custom_call.1
= control target key start
LH: loop header
LB: loop body
LE: loop exit
PB: predicated region body
PF: predicated region fallthrough
CT: control target
= control target key end

     0   :  { %10 = vsyncpa [#allocation3], 0  ;;  %s1978_s0 = inlined_call_operand.vmem [shape: f32[2,256,8], index: 0, kind: input, shape index: {}]   ;;  %s1979_s1 = inlined_call_operand.vmem [shape: f32[2,256,16], index: 1, kind: input, shape index: {}]   ;;  %s1980_s2 = inlined_call_operand.vmem [shape: f32[8,128], index: 2, kind: input, shape index: {}]   ;;  %s1981_s3 = inlined_call_operand.vmem [shape: f32[16,128], index: 3, kind: input, shape index: {}]   ;;  %s1982_s4 = inlined_call_operand.vmem [shape: f32[1,128], index: 4, kind: input, shape index: {}]   ;;  %s1983_s5 = inlined_call_operand.hbm [shape: f32[2,256,128], index: 5, kind: output, shape index: {}]  }
   0x1   :  { %12 = vsyncpa [#allocation3 + $0x1], 0  ;;  %s1643_s18 = smov 0   ;;  %s1645_s19 = smov 0  }
   0x2   :  { %s1647_s20 = smov 0   ;;  %s1649_s21 = smov 0  }
   0x3   :  { %s1651_s22 = smov 0   ;;  %s1653_s23 = smov 0  }
   0x4 LB: > { %s1185_s24 = sadd.s32 4294967295, %s1608_s23   ;;  %s1186_s25 = sadd.s32 4294967294, %s1608_s23   ;;  %s1608_s23 = sphi %s1653_s23, %s18_s23   ;;  %s1604_s22 = sphi %s1651_s22, %s1990_s22   ;;  %s1600_s21 = sphi %s1649_s21, %s1989_s21   ;;  %s1596_s20 = sphi %s1647_s20, %s1988_s20   ;;  %s1592_s19 = sphi %s1645_s19, %s1987_s19   ;;  %s1588_s18 = sphi %s1643_s18, %s1986_s18  }
   0x5   : > { %s30_s26 = sadd.s32 1, %s1604_s22  ;;  %s158_s27 = sadd.s32 1, %s1596_s20 }
   0x6   : > { %p32_p0 = scmp.ge.s32.totalorder %s30_s26, 2  ;;  %p168_p1 = scmp.ne.s32.totalorder %s1596_s20, %s1592_s19 }
   0x7   : > { %p169_p2 = scmp.eq.s32.totalorder %s1185_s24, 1  ;;  %p174_p3 = scmp.ne.s32.totalorder %s1592_s19, %s1588_s18 }
   0x8   : > { %s1992_s26 = smov (%p32_p0, %s30_s26), 0  ;;  %p175_p5 = scmp.eq.s32.totalorder %s1186_s25, 1 }
   0x9   : > { %p1683_p4 = por %p169_p2, %p168_p1  ;;  %s153_s29 = ssub.s32 %s1604_s22, %s1992_s26 }
   0xa   : > { %p1189_p6 = scmp.ge.s32.totalorder %s1608_s23, 1  ;;  %p156_p7 = scmp.eq.s32.totalorder %s153_s29, 0 }
   0xb   : > { %p1690_p8 = por %p175_p5, %p174_p3  ;;  %p228_p9 = scmp.lt.s32.totalorder %s1608_s23, 3 }
   0xc   : > { %s1696_s6 = scalar_select %p156_p7, %s1596_s20, %s158_s27  }
   0xd   : > { %p229_p10 = pnand %p1189_p6, %p228_p9 }
   0xe   : > { %v355_v0 = vld [vmem:[%s1981_s3] sm:$0xff] (!%p229_p10)  ;;  %v356_v1 = vld [vmem:[%s1981_s3 + $0x8] sm:$0xff] (!%p229_p10)  ;;  %p270_p11 = scmp.lt.s32.totalorder (!%p229_p10), %s1600_s21, 1  ;;  %vm357_vm0 = vcmask (!%p229_p10), 130048   ;;  %vm679_vm1 = vcmask (!%p229_p10), 64512   ;;  %s266_s29 = sand.u32 (!%p229_p10), 1, %s1592_s19  }
   0xf   : > { %232 = sbr.rel (%p229_p10) target bundleno = 321 (0x141), region = 40  ;;  %v322_v2 = vld [vmem:[%s1980_s2] sm:$0xff] (!%p229_p10)  ;;  %v1437_v3 = vpack.c.bf16 (!%p229_p10), %v356_v1, %v355_v0  ;;  %s1190_s7 = sshll.u32 (!%p229_p10), %s266_s29, 8 }
  0x10   : > { %1387 = vmatprep.subr.mxu0 (!%p229_p10), %v322_v2  ;;  %s1857_s10 = scalar_lea.vmem (!%p229_p10), [#allocation2], %s1190_s7  ;;  %s1267_s11 = sshll.u32 (!%p229_p10), %s1600_s21, 12 }
  0x11   : > { %1388 = vmatpush3.msra.mxu0 (!%p229_p10), %v322_v2  ;;  %1438 = vmatprep.subr.bf16.mxu1 (!%p229_p10), %v1437_v3  ;;  %s1088_s12 = sshll.u32 (!%p229_p10), %s1857_s10, 4  ;;  %s1923_s15 = scalar_lea.hbm (!%p229_p10), %s1983_s5, %s1267_s11  ;;  %s1925_s12 = int_to_ptr.vmem [resolvable:$true] %s1088_s12 }
  0x12   : > { %1440 = vmatpush3.bf16.msra.mxu1 (!%p229_p10), %v1437_v3  ;;  %s1530_s16 = scalar_lea.vmem (!%p229_p10), %s1925_s12, 4096 }
  0x13   : > { %p1531_p12 = scmp.ne.s32.totalorder (!%p229_p10), %s1925_s12, %s1530_s16 }
  0x15   : > { %p1532_p13 = pnand (!%p229_p10), %p1531_p12, %p1683_p4 }
  0x16   : > { %s271_s13 = scalar_select %p270_p11, %s1600_s21, 1 }
  0x17   : > { %s1932_s21 = scalar_lea.sflag [#allocation3], %s266_s29  ;;  %p1533_p0 = pneg %p1532_p13 }
  0x18   : > { %s1265_s14 = sshll.u32 %s271_s13, 8 }
  0x19   : > { %s1712_s17 = scalar_lea.vmem %s1979_s1, %s1265_s14  ;;  %s1717_s27 = scalar_lea.vmem %s1978_s0, %s1265_s14 }
  0x1a   : > { %v323_v4 = vld [vmem:[%s1712_s17] sm:$0xff]  ;;  %v324_v6 = vld [vmem:[%s1712_s17 + $0x8] sm:$0xff]  ;;  %v325_v8 = vld [vmem:[%s1712_s17 + $0x10] sm:$0xff] }
  0x1b   : > { %v290_v5 = vld [vmem:[%s1717_s27] sm:$0xff]  ;;  %1339 = vmatprep.mubr.msk.f32.mxu1 %vm357_vm0, %v323_v4  ;;  %v291_v7 = vld [vmem:[%s1717_s27 + $0x8] sm:$0xff]  ;;  %v292_v9 = vld [vmem:[%s1717_s27 + $0x10] sm:$0xff] }
  0x1c   : > { %1389 = vmatprep.mubr.msk.f32.mxu0 %vm679_vm1, %v290_v5  ;;  %1340 = vmatmul.mubr.msk.f32.vlgmr.msra.gmra.mrb[0].mxu1 %vm357_vm0, %v324_v6  ;;  %v326_v10 = vld [vmem:[%s1712_s17 + $0x18] sm:$0xff]  ;;  %v327_v12 = vld [vmem:[%s1712_s17 + $0x20] sm:$0xff]  ;;  %v328_v14 = vld [vmem:[%s1712_s17 + $0x28] sm:$0xff] }
  0x1d   : > { %1390 = vmatmul.mubr.msk.f32.vlgmr.msra.gmra.mrb[0].mxu0 %vm679_vm1, %v291_v7  ;;  %1342 = vmatprep.mubr.msk.f32.mxu1 %vm357_vm0, %v325_v8  ;;  %v293_v11 = vld [vmem:[%s1717_s27 + $0x18] sm:$0xff]  ;;  %v294_v13 = vld [vmem:[%s1717_s27 + $0x20] sm:$0xff]  ;;  %v295_v15 = vld [vmem:[%s1717_s27 + $0x28] sm:$0xff] }
  0x1e   : > { %1392 = vmatprep.mubr.msk.f32.mxu0 %vm679_vm1, %v292_v9  ;;  %v329_v16 = vld [vmem:[%s1712_s17 + $0x30] sm:$0xff]  ;;  %v330_v18 = vld [vmem:[%s1712_s17 + $0x38] sm:$0xff]  ;;  %v331_v20 = vld [vmem:[%s1712_s17 + $0x40] sm:$0xff] }
  0x1f   : > { %v296_v17 = vld [vmem:[%s1717_s27 + $0x30] sm:$0xff]  ;;  %v297_v19 = vld [vmem:[%s1717_s27 + $0x38] sm:$0xff]  ;;  %v298_v21 = vld [vmem:[%s1717_s27 + $0x40] sm:$0xff] }
  0x20   : > { %1343 = vmatmul.mubr.msk.f32.gmra.mrb[2].mxu1 %vm357_vm0, %v326_v10  ;;  %v332_v22 = vld [vmem:[%s1712_s17 + $0x48] sm:$0xff]  ;;  %v333_v24 = vld [vmem:[%s1712_s17 + $0x50] sm:$0xff]  ;;  %v334_v26 = vld [vmem:[%s1712_s17 + $0x58] sm:$0xff] }
  0x21   : > { %1393 = vmatmul.mubr.msk.f32.gmra.mrb[2].mxu0 %vm679_vm1, %v293_v11  ;;  %1345 = vmatprep.mubr.msk.f32.mxu1 %vm357_vm0, %v327_v12  ;;  %v299_v23 = vld [vmem:[%s1717_s27 + $0x48] sm:$0xff]  ;;  %v300_v25 = vld [vmem:[%s1717_s27 + $0x50] sm:$0xff]  ;;  %v301_v27 = vld [vmem:[%s1717_s27 + $0x58] sm:$0xff] }
  0x22   : > { %1395 = vmatprep.mubr.msk.f32.mxu0 %vm679_vm1, %v294_v13  ;;  %v335_v28 = vld [vmem:[%s1712_s17 + $0x60] sm:$0xff]  ;;  %v336_v30 = vld [vmem:[%s1712_s17 + $0x68] sm:$0xff]  ;;  %v337_v32 = vld [vmem:[%s1712_s17 + $0x70] sm:$0xff] }
  0x23   : > { %v302_v29 = vld [vmem:[%s1717_s27 + $0x60] sm:$0xff]  ;;  %v303_v31 = vld [vmem:[%s1717_s27 + $0x68] sm:$0xff]  ;;  %v304_v33 = vld [vmem:[%s1717_s27 + $0x70] sm:$0xff] }
  0x24   : > { %1346 = vmatmul.mubr.msk.f32.gmra.mrb[4].mxu1 %vm357_vm0, %v328_v14  ;;  %v338_v34 = vld [vmem:[%s1712_s17 + $0x78] sm:$0xff]  ;;  %v339_v36 = vld [vmem:[%s1712_s17 + $0x80] sm:$0xff]  ;;  %v340_v38 = vld [vmem:[%s1712_s17 + $0x88] sm:$0xff] }
  0x25   : > { %1396 = vmatmul.mubr.msk.f32.gmra.mrb[4].mxu0 %vm679_vm1, %v295_v15  ;;  %1348 = vmatprep.mubr.msk.f32.mxu1 %vm357_vm0, %v329_v16  ;;  %v305_v35 = vld [vmem:[%s1717_s27 + $0x78] sm:$0xff]  ;;  %v306_v37 = vld [vmem:[%s1717_s27 + $0x80] sm:$0xff]  ;;  %v307_v39 = vld [vmem:[%s1717_s27 + $0x88] sm:$0xff] }
  0x26   : > { %1398 = vmatprep.mubr.msk.f32.mxu0 %vm679_vm1, %v296_v17  ;;  %v341_v40 = vld [vmem:[%s1712_s17 + $0x90] sm:$0xff]  ;;  %v342_v42 = vld [vmem:[%s1712_s17 + $0x98] sm:$0xff]  ;;  %v343_v44 = vld [vmem:[%s1712_s17 + $0xa0] sm:$0xff] }
  0x27   : > { %v308_v41 = vld [vmem:[%s1717_s27 + $0x90] sm:$0xff]  ;;  %v309_v43 = vld [vmem:[%s1717_s27 + $0x98] sm:$0xff]  ;;  %v310_v45 = vld [vmem:[%s1717_s27 + $0xa0] sm:$0xff] }
  0x28   : > { %1349 = vmatmul.mubr.msk.f32.gmra.mrb[6].mxu1 %vm357_vm0, %v330_v18  ;;  %v344_v46 = vld [vmem:[%s1712_s17 + $0xa8] sm:$0xff]  ;;  %v345_v48 = vld [vmem:[%s1712_s17 + $0xb0] sm:$0xff]  ;;  %v346_v50 = vld [vmem:[%s1712_s17 + $0xb8] sm:$0xff] }
  0x29   : > { %1399 = vmatmul.mubr.msk.f32.gmra.mrb[6].mxu0 %vm679_vm1, %v297_v19  ;;  %1351 = vmatprep.mubr.msk.f32.mxu1 %vm357_vm0, %v331_v20  ;;  %v311_v47 = vld [vmem:[%s1717_s27 + $0xa8] sm:$0xff]  ;;  %v312_v49 = vld [vmem:[%s1717_s27 + $0xb0] sm:$0xff]  ;;  %v313_v51 = vld [vmem:[%s1717_s27 + $0xb8] sm:$0xff] }
  0x2a   : > { %1401 = vmatprep.mubr.msk.f32.mxu0 %vm679_vm1, %v298_v21  ;;  %v347_v52 = vld [vmem:[%s1712_s17 + $0xc0] sm:$0xff]  ;;  %v348_v54 = vld [vmem:[%s1712_s17 + $0xc8] sm:$0xff]  ;;  %v349_v56 = vld [vmem:[%s1712_s17 + $0xd0] sm:$0xff] }
  0x2b   : > { %v314_v53 = vld [vmem:[%s1717_s27 + $0xc0] sm:$0xff]  ;;  %v315_v55 = vld [vmem:[%s1717_s27 + $0xc8] sm:$0xff]  ;;  %v316_v57 = vld [vmem:[%s1717_s27 + $0xd0] sm:$0xff] }
  0x2c   : > { %1352 = vmatmul.mubr.msk.f32.gmra.mrb[8].mxu1 %vm357_vm0, %v332_v22  ;;  %v350_v58 = vld [vmem:[%s1712_s17 + $0xd8] sm:$0xff]  ;;  %v351_v60 = vld [vmem:[%s1712_s17 + $0xe0] sm:$0xff]  ;;  %v352_v62 = vld [vmem:[%s1712_s17 + $0xe8] sm:$0xff] }
  0x2d   : > { %1402 = vmatmul.mubr.msk.f32.gmra.mrb[8].mxu0 %vm679_vm1, %v299_v23  ;;  %1354 = vmatprep.mubr.msk.f32.mxu1 %vm357_vm0, %v333_v24  ;;  %v317_v59 = vld [vmem:[%s1717_s27 + $0xd8] sm:$0xff]  ;;  %v318_v61 = vld [vmem:[%s1717_s27 + $0xe0] sm:$0xff]  ;;  %v319_v63 = vld [vmem:[%s1717_s27 + $0xe8] sm:$0xff] }
  0x2e   : > { %1404 = vmatprep.mubr.msk.f32.mxu0 %vm679_vm1, %v300_v25  ;;  %v353_v0 = vld [vmem:[%s1712_s17 + $0xf0] sm:$0xff]  ;;  %v354_v2 = vld [vmem:[%s1712_s17 + $0xf8] sm:$0xff]  ;;  %v1853_v6 = vld [vmem:[%s1982_s4] ss:$0 sm:$0xff]  ;;  %s1610_s17 = smov [#allocation2]  }
  0x2f   : > { %v320_v1 = vld [vmem:[%s1717_s27 + $0xf0] sm:$0xff]  ;;  %v321_v3 = vld [vmem:[%s1717_s27 + $0xf8] sm:$0xff]  ;;  %s1534_s24 = sshll.u32 %s1610_s17, 4  ;;  %s1535_s24 = int_to_ptr.vmem [resolvable:$false] %s1534_s24 }
  0x30   : > { %1355 = vmatmul.mubr.msk.f32.gmra.mrb[10].mxu1 %vm357_vm0, %v334_v26  ;;  %s1536_s25 = scalar_lea.vmem %s1535_s24, 8192  ;;  %p1537_p1 = scmp.lt.s32.totalorder %s1925_s12, %s1535_s24 }
  0x31   : > { %1405 = vmatmul.mubr.msk.f32.gmra.mrb[10].mxu0 %vm679_vm1, %v301_v27  ;;  %1357 = vmatprep.mubr.msk.f32.mxu1 %vm357_vm0, %v335_v28  ;;  %p1538_p2 = scmp.lt.s32.totalorder %s1536_s25, %s1530_s16 }
  0x32   : > { %1407 = vmatprep.mubr.msk.f32.mxu0 %vm679_vm1, %v302_v29 }
  0x33   : > { %p1539_p3 = por %p1538_p2, %p1537_p1 }
  0x34   : > { %1358 = vmatmul.mubr.msk.f32.gmra.mrb[12].mxu1 %vm357_vm0, %v336_v30 }
  0x35   : > { %1408 = vmatmul.mubr.msk.f32.gmra.mrb[12].mxu0 %vm679_vm1, %v303_v31  ;;  %1360 = vmatprep.mubr.msk.f32.mxu1 %vm357_vm0, %v337_v32  ;;  %p1540_p5 = pnand %p1539_p3, %p1533_p0 }
  0x36   : > { %1410 = vmatprep.mubr.msk.f32.mxu0 %vm679_vm1, %v304_v33 }
  0x38   : > { %1361 = vmatmul.mubr.msk.f32.gmra.mrb[14].mxu1 %vm357_vm0, %v338_v34 }
  0x39   : > { %1411 = vmatmul.mubr.msk.f32.gmra.mrb[14].mxu0 %vm679_vm1, %v305_v35  ;;  %1363 = vmatprep.mubr.msk.f32.mxu1 %vm357_vm0, %v339_v36 }
  0x3a   : > { %1413 = vmatprep.mubr.msk.f32.mxu0 %vm679_vm1, %v306_v37 }
  0x3c   : > { %1364 = vmatmul.mubr.msk.f32.gmra.mrb[16].mxu1 %vm357_vm0, %v340_v38 }
  0x3d   : > { %1414 = vmatmul.mubr.msk.f32.gmra.mrb[16].mxu0 %vm679_vm1, %v307_v39  ;;  %1366 = vmatprep.mubr.msk.f32.mxu1 %vm357_vm0, %v341_v40 }
  0x3e   : > { %1416 = vmatprep.mubr.msk.f32.mxu0 %vm679_vm1, %v308_v41 }
  0x40   : > { %1367 = vmatmul.mubr.msk.f32.gmra.mrb[18].mxu1 %vm357_vm0, %v342_v42 }
  0x41   : > { %1417 = vmatmul.mubr.msk.f32.gmra.mrb[18].mxu0 %vm679_vm1, %v309_v43  ;;  %1369 = vmatprep.mubr.msk.f32.mxu1 %vm357_vm0, %v343_v44 }
  0x42   : > { %1419 = vmatprep.mubr.msk.f32.mxu0 %vm679_vm1, %v310_v45 }
  0x44   : > { %1370 = vmatmul.mubr.msk.f32.gmra.mrb[20].mxu1 %vm357_vm0, %v344_v46 }
  0x45   : > { %1420 = vmatmul.mubr.msk.f32.gmra.mrb[20].mxu0 %vm679_vm1, %v311_v47  ;;  %1372 = vmatprep.mubr.msk.f32.mxu1 %vm357_vm0, %v345_v48 }
  0x46   : > { %1422 = vmatprep.mubr.msk.f32.mxu0 %vm679_vm1, %v312_v49 }
  0x48   : > { %1373 = vmatmul.mubr.msk.f32.gmra.mrb[22].mxu1 %vm357_vm0, %v346_v50 }
  0x49   : > { %1423 = vmatmul.mubr.msk.f32.gmra.mrb[22].mxu0 %vm679_vm1, %v313_v51  ;;  %1375 = vmatprep.mubr.msk.f32.mxu1 %vm357_vm0, %v347_v52 }
  0x4a   : > { %1425 = vmatprep.mubr.msk.f32.mxu0 %vm679_vm1, %v314_v53 }
  0x4c   : > { %1376 = vmatmul.mubr.msk.f32.gmra.mrb[24].mxu1 %vm357_vm0, %v348_v54 }
  0x4d   : > { %1426 = vmatmul.mubr.msk.f32.gmra.mrb[24].mxu0 %vm679_vm1, %v315_v55  ;;  %1378 = vmatprep.mubr.msk.f32.mxu1 %vm357_vm0, %v349_v56 }
  0x4e   : > { %1428 = vmatprep.mubr.msk.f32.mxu0 %vm679_vm1, %v316_v57 }
  0x50   : > { %1379 = vmatmul.mubr.msk.f32.gmra.mrb[26].mxu1 %vm357_vm0, %v350_v58 }
  0x51   : > { %1429 = vmatmul.mubr.msk.f32.gmra.mrb[26].mxu0 %vm679_vm1, %v317_v59  ;;  %1381 = vmatprep.mubr.msk.f32.mxu1 %vm357_vm0, %v351_v60 }
  0x52   : > { %1431 = vmatprep.mubr.msk.f32.mxu0 %vm679_vm1, %v318_v61 }
  0x54   : > { %1382 = vmatmul.mubr.msk.f32.gmra.mrb[28].mxu1 %vm357_vm0, %v352_v62 }
  0x55   : > { %1432 = vmatmul.mubr.msk.f32.gmra.mrb[28].mxu0 %vm679_vm1, %v319_v63  ;;  %1384 = vmatprep.mubr.msk.f32.mxu1 %vm357_vm0, %v353_v0 }
  0x56   : > { %1434 = vmatprep.mubr.msk.f32.mxu0 %vm679_vm1, %v320_v1 }
  0x58   : > { %1385 = vmatmul.mubr.msk.f32.gmra.mrb[30].mxu1 %vm357_vm0, %v354_v2 }
  0x59   : > { %1435 = vmatmul.mubr.msk.f32.gmra.mrb[30].mxu0 %vm679_vm1, %v321_v3 }
  0xef   : > { %v1341_v4 = vpop.f32.mrb[0].mxu1 }
  0xf0   : > { %v1391_v5 = vpop.f32.mrb[0].mxu0  ;;  %v520_v8 = vpop.f32.mrb[1].mxu1 }
  0xf1   : > { %v848_v7 = vadd.f32 %v1391_v5, %v1341_v4  ;;  %v842_v9 = vpop.f32.mrb[1].mxu0 }
  0xf2   : > { %v843_v10 = vadd.f32 %v842_v9, %v520_v8 }
  0xf3   : > { %v1009_v11 = vadd.f32 %v1853_v6, %v848_v7  ;;  %v1344_v13 = vpop.f32.mrb[2].mxu1 }
  0xf4   : > { %v1008_v12 = vadd.f32 %v1853_v6, %v843_v10  ;;  %v1394_v14 = vpop.f32.mrb[2].mxu0  ;;  %v530_v16 = vpop.f32.mrb[3].mxu1 }
  0xf5   : > { %1041 = vst [vmem:[%s1857_s10 + $0x8] sm:$0xff] %v1009_v11  ;;  %v858_v15 = vadd.f32 %v1394_v14, %v1344_v13  ;;  %v852_v17 = vpop.f32.mrb[3].mxu0 }
  0xf6   : > { %1040 = vst [vmem:[%s1857_s10] sm:$0xff] %v1008_v12  ;;  %v853_v18 = vadd.f32 %v852_v17, %v530_v16 }
  0xf7   : > { %v1011_v19 = vadd.f32 %v1853_v6, %v858_v15  ;;  %v1347_v21 = vpop.f32.mrb[4].mxu1 }
  0xf8   : > { %v1010_v20 = vadd.f32 %v1853_v6, %v853_v18  ;;  %v1397_v22 = vpop.f32.mrb[4].mxu0  ;;  %v540_v24 = vpop.f32.mrb[5].mxu1 }
  0xf9   : > { %1043 = vst [vmem:[%s1857_s10 + $0x18] sm:$0xff] %v1011_v19  ;;  %v868_v23 = vadd.f32 %v1397_v22, %v1347_v21  ;;  %v862_v25 = vpop.f32.mrb[5].mxu0 }
  0xfa   : > { %1042 = vst [vmem:[%s1857_s10 + $0x10] sm:$0xff] %v1010_v20  ;;  %v863_v26 = vadd.f32 %v862_v25, %v540_v24 }
  0xfb   : > { %v1013_v27 = vadd.f32 %v1853_v6, %v868_v23  ;;  %v1350_v29 = vpop.f32.mrb[6].mxu1 }
  0xfc   : > { %v1012_v28 = vadd.f32 %v1853_v6, %v863_v26  ;;  %v1400_v30 = vpop.f32.mrb[6].mxu0  ;;  %v550_v32 = vpop.f32.mrb[7].mxu1 }
  0xfd   : > { %1045 = vst [vmem:[%s1857_s10 + $0x28] sm:$0xff] %v1013_v27  ;;  %v878_v31 = vadd.f32 %v1400_v30, %v1350_v29  ;;  %v872_v33 = vpop.f32.mrb[7].mxu0 }
  0xfe   : > { %1044 = vst [vmem:[%s1857_s10 + $0x20] sm:$0xff] %v1012_v28  ;;  %v873_v34 = vadd.f32 %v872_v33, %v550_v32 }
  0xff   : > { %v1015_v35 = vadd.f32 %v1853_v6, %v878_v31  ;;  %v1353_v37 = vpop.f32.mrb[8].mxu1 }
 0x100   : > { %v1014_v36 = vadd.f32 %v1853_v6, %v873_v34  ;;  %v1403_v38 = vpop.f32.mrb[8].mxu0  ;;  %v560_v40 = vpop.f32.mrb[9].mxu1 }
 0x101   : > { %1047 = vst [vmem:[%s1857_s10 + $0x38] sm:$0xff] %v1015_v35  ;;  %v888_v39 = vadd.f32 %v1403_v38, %v1353_v37  ;;  %v882_v41 = vpop.f32.mrb[9].mxu0 }
 0x102   : > { %1046 = vst [vmem:[%s1857_s10 + $0x30] sm:$0xff] %v1014_v36  ;;  %v883_v42 = vadd.f32 %v882_v41, %v560_v40 }
 0x103   : > { %v1017_v43 = vadd.f32 %v1853_v6, %v888_v39  ;;  %v1356_v45 = vpop.f32.mrb[10].mxu1 }
 0x104   : > { %v1016_v44 = vadd.f32 %v1853_v6, %v883_v42  ;;  %v1406_v46 = vpop.f32.mrb[10].mxu0  ;;  %v570_v48 = vpop.f32.mrb[11].mxu1 }
 0x105   : > { %1049 = vst [vmem:[%s1857_s10 + $0x48] sm:$0xff] %v1017_v43  ;;  %v898_v47 = vadd.f32 %v1406_v46, %v1356_v45  ;;  %v892_v49 = vpop.f32.mrb[11].mxu0 }
 0x106   : > { %1048 = vst [vmem:[%s1857_s10 + $0x40] sm:$0xff] %v1016_v44  ;;  %v893_v50 = vadd.f32 %v892_v49, %v570_v48 }
 0x107   : > { %v1019_v51 = vadd.f32 %v1853_v6, %v898_v47  ;;  %v1359_v53 = vpop.f32.mrb[12].mxu1 }
 0x108   : > { %v1018_v52 = vadd.f32 %v1853_v6, %v893_v50  ;;  %v1409_v54 = vpop.f32.mrb[12].mxu0  ;;  %v580_v56 = vpop.f32.mrb[13].mxu1 }
 0x109   : > { %1051 = vst [vmem:[%s1857_s10 + $0x58] sm:$0xff] %v1019_v51  ;;  %v908_v55 = vadd.f32 %v1409_v54, %v1359_v53  ;;  %v902_v57 = vpop.f32.mrb[13].mxu0 }
 0x10a   : > { %1050 = vst [vmem:[%s1857_s10 + $0x50] sm:$0xff] %v1018_v52  ;;  %v903_v58 = vadd.f32 %v902_v57, %v580_v56 }
 0x10b   : > { %v1021_v59 = vadd.f32 %v1853_v6, %v908_v55  ;;  %v1362_v61 = vpop.f32.mrb[14].mxu1 }
 0x10c   : > { %v1020_v60 = vadd.f32 %v1853_v6, %v903_v58  ;;  %v1412_v62 = vpop.f32.mrb[14].mxu0  ;;  %v590_v0 = vpop.f32.mrb[15].mxu1 }
 0x10d   : > { %1053 = vst [vmem:[%s1857_s10 + $0x68] sm:$0xff] %v1021_v59  ;;  %v918_v63 = vadd.f32 %v1412_v62, %v1362_v61  ;;  %v912_v1 = vpop.f32.mrb[15].mxu0 }
 0x10e   : > { %1052 = vst [vmem:[%s1857_s10 + $0x60] sm:$0xff] %v1020_v60  ;;  %v913_v2 = vadd.f32 %v912_v1, %v590_v0 }
 0x10f   : > { %v1023_v3 = vadd.f32 %v1853_v6, %v918_v63  ;;  %v1365_v5 = vpop.f32.mrb[16].mxu1 }
 0x110   : > { %v1022_v4 = vadd.f32 %v1853_v6, %v913_v2  ;;  %v1415_v7 = vpop.f32.mrb[16].mxu0  ;;  %v600_v9 = vpop.f32.mrb[17].mxu1 }
 0x111   : > { %1055 = vst [vmem:[%s1857_s10 + $0x78] sm:$0xff] %v1023_v3  ;;  %v928_v8 = vadd.f32 %v1415_v7, %v1365_v5  ;;  %v922_v10 = vpop.f32.mrb[17].mxu0 }
 0x112   : > { %1054 = vst [vmem:[%s1857_s10 + $0x70] sm:$0xff] %v1022_v4  ;;  %v923_v11 = vadd.f32 %v922_v10, %v600_v9 }
 0x113   : > { %v1025_v12 = vadd.f32 %v1853_v6, %v928_v8  ;;  %v1368_v14 = vpop.f32.mrb[18].mxu1 }
 0x114   : > { %v1024_v13 = vadd.f32 %v1853_v6, %v923_v11  ;;  %v1418_v15 = vpop.f32.mrb[18].mxu0  ;;  %v610_v17 = vpop.f32.mrb[19].mxu1 }
 0x115   : > { %1057 = vst [vmem:[%s1857_s10 + $0x88] sm:$0xff] %v1025_v12  ;;  %v938_v16 = vadd.f32 %v1418_v15, %v1368_v14  ;;  %v932_v18 = vpop.f32.mrb[19].mxu0 }
 0x116   : > { %1056 = vst [vmem:[%s1857_s10 + $0x80] sm:$0xff] %v1024_v13  ;;  %v933_v19 = vadd.f32 %v932_v18, %v610_v17 }
 0x117   : > { %v1027_v20 = vadd.f32 %v1853_v6, %v938_v16  ;;  %v1371_v22 = vpop.f32.mrb[20].mxu1 }
 0x118   : > { %v1026_v21 = vadd.f32 %v1853_v6, %v933_v19  ;;  %v1421_v23 = vpop.f32.mrb[20].mxu0  ;;  %v620_v25 = vpop.f32.mrb[21].mxu1 }
 0x119   : > { %1059 = vst [vmem:[%s1857_s10 + $0x98] sm:$0xff] %v1027_v20  ;;  %v948_v24 = vadd.f32 %v1421_v23, %v1371_v22  ;;  %v942_v26 = vpop.f32.mrb[21].mxu0 }
 0x11a   : > { %1058 = vst [vmem:[%s1857_s10 + $0x90] sm:$0xff] %v1026_v21  ;;  %v943_v27 = vadd.f32 %v942_v26, %v620_v25 }
 0x11b   : > { %v1029_v28 = vadd.f32 %v1853_v6, %v948_v24  ;;  %v1374_v30 = vpop.f32.mrb[22].mxu1 }
 0x11c   : > { %v1028_v29 = vadd.f32 %v1853_v6, %v943_v27  ;;  %v1424_v31 = vpop.f32.mrb[22].mxu0  ;;  %v630_v33 = vpop.f32.mrb[23].mxu1 }
 0x11d   : > { %1061 = vst [vmem:[%s1857_s10 + $0xa8] sm:$0xff] %v1029_v28  ;;  %v958_v32 = vadd.f32 %v1424_v31, %v1374_v30  ;;  %v952_v34 = vpop.f32.mrb[23].mxu0 }
 0x11e   : > { %1060 = vst [vmem:[%s1857_s10 + $0xa0] sm:$0xff] %v1028_v29  ;;  %v953_v35 = vadd.f32 %v952_v34, %v630_v33 }
 0x11f   : > { %v1031_v36 = vadd.f32 %v1853_v6, %v958_v32  ;;  %v1377_v38 = vpop.f32.mrb[24].mxu1 }
 0x120   : > { %v1030_v37 = vadd.f32 %v1853_v6, %v953_v35  ;;  %v1427_v39 = vpop.f32.mrb[24].mxu0  ;;  %v640_v41 = vpop.f32.mrb[25].mxu1 }
 0x121   : > { %1063 = vst [vmem:[%s1857_s10 + $0xb8] sm:$0xff] %v1031_v36  ;;  %v968_v40 = vadd.f32 %v1427_v39, %v1377_v38  ;;  %v962_v42 = vpop.f32.mrb[25].mxu0 }
 0x122   : > { %1062 = vst [vmem:[%s1857_s10 + $0xb0] sm:$0xff] %v1030_v37  ;;  %v963_v43 = vadd.f32 %v962_v42, %v640_v41 }
 0x123   : > { %v1033_v44 = vadd.f32 %v1853_v6, %v968_v40  ;;  %v1380_v46 = vpop.f32.mrb[26].mxu1 }
 0x124   : > { %v1032_v45 = vadd.f32 %v1853_v6, %v963_v43  ;;  %v1430_v47 = vpop.f32.mrb[26].mxu0  ;;  %v650_v49 = vpop.f32.mrb[27].mxu1 }
 0x125   : > { %1065 = vst [vmem:[%s1857_s10 + $0xc8] sm:$0xff] %v1033_v44  ;;  %v978_v48 = vadd.f32 %v1430_v47, %v1380_v46  ;;  %v972_v50 = vpop.f32.mrb[27].mxu0 }
 0x126   : > { %1064 = vst [vmem:[%s1857_s10 + $0xc0] sm:$0xff] %v1032_v45  ;;  %v973_v51 = vadd.f32 %v972_v50, %v650_v49 }
 0x127   : > { %v1035_v52 = vadd.f32 %v1853_v6, %v978_v48  ;;  %v1383_v54 = vpop.f32.mrb[28].mxu1 }
 0x128   : > { %v1034_v53 = vadd.f32 %v1853_v6, %v973_v51  ;;  %v1433_v55 = vpop.f32.mrb[28].mxu0  ;;  %v660_v57 = vpop.f32.mrb[29].mxu1 }
 0x129   : > { %1067 = vst [vmem:[%s1857_s10 + $0xd8] sm:$0xff] %v1035_v52  ;;  %v988_v56 = vadd.f32 %v1433_v55, %v1383_v54  ;;  %v982_v58 = vpop.f32.mrb[29].mxu0 }
 0x12a   : > { %1066 = vst [vmem:[%s1857_s10 + $0xd0] sm:$0xff] %v1034_v53  ;;  %v983_v59 = vadd.f32 %v982_v58, %v660_v57 }
 0x12b   : > { %v1037_v60 = vadd.f32 %v1853_v6, %v988_v56  ;;  %v1386_v62 = vpop.f32.mrb[30].mxu1 }
 0x12c   : > { %v1036_v61 = vadd.f32 %v1853_v6, %v983_v59  ;;  %v1436_v63 = vpop.f32.mrb[30].mxu0  ;;  %v670_v1 = vpop.f32.mrb[31].mxu1 }
 0x12d   : > { %1069 = vst [vmem:[%s1857_s10 + $0xe8] sm:$0xff] %v1037_v60  ;;  %v998_v0 = vadd.f32 %v1436_v63, %v1386_v62  ;;  %v992_v2 = vpop.f32.mrb[31].mxu0 }
 0x12e   : > { %1068 = vst [vmem:[%s1857_s10 + $0xe0] sm:$0xff] %v1036_v61  ;;  %v993_v3 = vadd.f32 %v992_v2, %v670_v1 }
 0x12f   : > { %v1039_v4 = vadd.f32 %v1853_v6, %v998_v0 }
 0x130   : > { %v1038_v5 = vadd.f32 %v1853_v6, %v993_v3 }
 0x131   : > { %1071 = vst [vmem:[%s1857_s10 + $0xf8] sm:$0xff] %v1039_v4 }
 0x132   : > { %1070 = vst [vmem:[%s1857_s10 + $0xf0] sm:$0xff] %v1038_v5 }
 0x133   : > { %1543 = shalt.err (!%p1540_p5)
}
 0x134   : > { %s1544_s27 = scalar_lea.hbm %s1923_s15, 4096  ;;  %s1548_s8 = scalar_lea.hbm %s1983_s5, 8192 }
 0x135   : > { %p1545_p6 = scmp.ne.s32.totalorder %s1923_s15, %s1544_s27  ;;  %p1549_p10 = scmp.lt.u32.totalorder %s1923_s15, %s1983_s5 }
 0x136   : > { %p1550_p11 = scmp.lt.u32.totalorder %s1548_s8, %s1544_s27  ;;  %p1552_p13 = scmp.lt.u32.totalorder %s1544_s27, %s1923_s15 }
 0x137   : > { %p1546_p7 = pnand %p1545_p6, %p1683_p4 }
 0x138   : > { %p1551_p12 = por %p1550_p11, %p1549_p10 }
 0x139   : > { %p1547_p9 = pneg %p1546_p7 }
 0x13a   : > { %p1553_p0 = por %p1552_p13, %p1551_p12 }
 0x13c   : > { %p1554_p1 = pnand %p1553_p0, %p1547_p9 }
 0x13e   : > { %1557 = shalt.err (!%p1554_p1)
}
 0x13f   : > { %s1611_s11 = smov 128   ;;  %s1612_s13 = smov 8  }
 0x140   : > { %1473 = dma.vmem_to_hbm [thread:$0]  (%p1683_p4), %s1925_s12, 4096, %s1923_s15, %s1932_s21, %s1611_s11, %s1611_s11, %s1612_s13  }
 0x141 PF: > { %p1479_p2 = scmp.ge.s32.totalorder %s1608_s23, 2  ;;  %s1103_s14 = sand.u32 1, %s1588_s18  }
 0x142   : > { %s1104_s16 = scalar_lea.sflag [#allocation3], %s1103_s14 }
 0x143   : > { %p1476_p3 = pnand %p1479_p2, %p1690_p8 }
 0x145   : > { %1583 = dma.done.wait (!%p1476_p3), %s1104_s16, 4096  }
 0x146   : > { %1585 = vsyncadd (!%p1476_p3), %s1104_s16, 4294963200  ;;  %s18_s23 = sadd.s32 1, %s1608_s23   ;;  %s1986_s18 = smov %s1592_s19 }
 0x147   : > { %p15_p5 = scmp.ge.s32.totalorder %s18_s23, 4   ;;  %s1987_s19 = smov %s1596_s20 }
 0x148   : > { %s1988_s20 = smov %s1696_s6  ;;  %s1989_s21 = smov %s1604_s22 }
 0x149   : > { %s1990_s22 = smov %s1992_s26  ;;  %17 = sbr.rel (!%p15_p5) target bundleno = 4 (0x4), region = 78 }
 0x150   :  { %1109 = vsyncpa [#allocation3], 1 }
 0x151   :  { %1111 = vsyncpa [#allocation3 + $0x1], 1 }

</bundles_post_ra>
